<compile_context>
chip_gen: v7x
topology: tpu7x:2x2x1
jax: 0.10.0
libtpu: 0.0.40
codegen_flags: <defaults>
</compile_context>

<pallas_src>
import jax
import jax.numpy as jnp
from jax.experimental import pallas as pl
from jax.experimental.pallas import tpu as pltpu


def _round_up(x, m):
    return ((x + m - 1) // m) * m


def _patch_embed_kernel(x_ref, w_ref, pos_ref, o_ref):
    # x_ref:   (1, TM, Kp) bf16 patch rows (row 0 of tile 0 is the zero cls row)
    # w_ref:   (Kp, Ep)    bf16 projection weight, resident across the grid
    # pos_ref: (TM, Ep)    f32  pos rows (+ conv bias; row 0 = cls_token+pos[0]),
    #                           resident across the inner batch loop
    # o_ref:   (1, TM, Ep) f32  full output rows (cls + patches)
    proj = jnp.dot(x_ref[0], w_ref[...],
                   preferred_element_type=jnp.float32)        # MXU, f32 acc
    o_ref[0] = (proj + pos_ref[...]).astype(o_ref.dtype)      # aligned VPU add + store


def patch_embedding(x, conv_w, conv_b, cls_token, pos_embed, patch_size):
    """x: (B, C, H, W) NCHW float32.  Returns (B, N+1, E) float32."""
    B, C, H, W = x.shape
    p = patch_size
    E = conv_w.shape[0]
    Gh, Gw = H // p, W // p
    N = Gh * Gw
    K = C * p * p
    R = N + 1                                     # cls row + patch rows

    # Aligned contraction / lane dims (zero padding is numerically exact).
    Kp = _round_up(K, 128)
    Ep = _round_up(E, 128)

    # ---- row tiling: full-width, sublane-aligned tiles, as large as fits ----
    R8 = _round_up(R, 8)
    TM = min(512, R8)

    def _footprint(tm):                           # double-buffered per-step bytes
        return (2 * tm * Kp * 2                   # bf16 patch rows
                + 2 * Kp * Ep * 2                 # bf16 weight (resident)
                + 2 * tm * Ep * 4                 # f32 pos rows (resident)
                + 2 * tm * Ep * 4)                # f32 output rows

    while TM > 8 and _footprint(TM) > (12 << 20):
        TM = max(8, _round_up(TM // 2, 8))
    R_pad = _round_up(R8, TM)
    NT = R_pad // TM

    # ---- XLA glue (pure layout plumbing, kept out of the kernel) ------------
    # bf16 FIRST so the materialized im2col buffer is half-size; row 0 and the
    # trailing pad rows (plus the K->Kp pad) come from the same zero-pad.
    xb = x.astype(jnp.bfloat16)
    patches = xb.reshape(B, C, Gh, p, Gw, p).transpose(0, 2, 4, 1, 3, 5)
    patches = patches.reshape(B, N, K)
    patches = jnp.pad(patches, ((0, 0), (1, R_pad - 1 - N), (0, Kp - K)))

    # Conv2d weight (E, C, p, p) -> (Kp, Ep) bf16 so conv == rows @ w_mat.
    w_mat = conv_w.reshape(E, K).T.astype(jnp.bfloat16)
    w_mat = jnp.pad(w_mat, ((0, Kp - K), (0, Ep - E)))

    # Positional rows (f32): row 0 = cls_token + pos[0] (matmul of the zero
    # patch row contributes 0); rows 1..N = pos[1:] + conv bias; pad rows = 0.
    pos2d = pos_embed.reshape(R, E)
    pos_rows = jnp.concatenate(
        [cls_token.reshape(1, E) + pos2d[:1],
         pos2d[1:] + conv_b[None, :]], axis=0)
    pos_rows = jnp.pad(pos_rows, ((0, R_pad - R), (0, Ep - E)))

    out = pl.pallas_call(
        _patch_embed_kernel,
        out_shape=jax.ShapeDtypeStruct((B, R_pad, Ep), jnp.float32),
        grid_spec=pltpu.PrefetchScalarGridSpec(
            num_scalar_prefetch=0,
            # Row-tile axis OUTER, batch INNER: weight and pos block indices do
            # not change across the inner batch loop -> fetched once per tile.
            grid=(NT, B),
            in_specs=[
                pl.BlockSpec((1, TM, Kp), lambda t, b: (b, t, 0)),   # patches
                # NOTE(v7x / 64 MiB VMEM): when growing TM/E further, mark the
                # resident weight/pos specs pipeline_mode=pl.Buffered(1) to
                # drop their dead second buffer.
                pl.BlockSpec((Kp, Ep), lambda t, b: (0, 0)),         # weight
                pl.BlockSpec((TM, Ep), lambda t, b: (t, 0)),         # pos+bias
            ],
            out_specs=pl.BlockSpec((1, TM, Ep), lambda t, b: (b, t, 0)),
        ),
        compiler_params=pltpu.CompilerParams(
            dimension_semantics=("parallel", "parallel")),
    )(patches, w_mat, pos_rows)

    # No cls concatenate: the kernel already produced the full sequence.
    # Only strip row / lane padding (no-op slices at real ViT widths).
    if R_pad == R and Ep == E:
        return out
    return out[:, :R, :E]


def _reference(x, conv_w, conv_b, cls_token, pos_embed, patch_size):
    """Pure-JAX reference mirroring the PyTorch forward (all f32)."""
    B = x.shape[0]
    E = conv_w.shape[0]
    y = jax.lax.conv_general_dilated(
        x, conv_w,
        window_strides=(patch_size, patch_size),
        padding="VALID",
        dimension_numbers=("NCHW", "OIHW", "NCHW"),
    ) + conv_b.reshape(1, E, 1, 1)
    y = y.reshape(B, E, -1).transpose(0, 2, 1)                # (B, N, E)
    cls = jnp.broadcast_to(cls_token, (B, 1, E))
    y = jnp.concatenate([cls, y], axis=1)
    return y + pos_embed


if __name__ == "__main__":
    # Small shapes consistent with the module:
    # batch=2, in_channels=4, img_size=16 (square), patch_size=4, emb_size=32
    B, C, IMG, P, E = 2, 4, 16, 4, 32
    N = (IMG // P) ** 2

    key = jax.random.PRNGKey(0)
    k_x, k_w, k_b, k_cls, k_pos = jax.random.split(key, 5)

    x = jax.random.normal(k_x, (B, C, IMG, IMG), dtype=jnp.float32)
    conv_w = jax.random.normal(k_w, (E, C, P, P), dtype=jnp.float32) * 0.02
    conv_b = jax.random.normal(k_b, (E,), dtype=jnp.float32) * 0.02
    cls_token = jax.random.normal(k_cls, (1, 1, E), dtype=jnp.float32)
    pos_embed = jax.random.normal(k_pos, (1, N + 1, E), dtype=jnp.float32)

    out = patch_embedding(x, conv_w, conv_b, cls_token, pos_embed, P)
    out = jax.block_until_ready(out)

    ref = _reference(x, conv_w, conv_b, cls_token, pos_embed, P)
    assert out.shape == (B, N + 1, E), out.shape
    max_err = float(jnp.max(jnp.abs(out - ref)))
    # bf16 matmul operands -> slightly looser tolerance than pure f32.
    assert jnp.allclose(out, ref, atol=2e-2, rtol=2e-2), max_err

    print("KERNEL_OK")
</pallas_src>

<mosaic_0001>
module attributes {stable_mosaic.version = 11 : i64} {
  func.func @_patch_embed_kernel(%arg0: i32, %arg1: i32, %arg2: memref<1x24x128xbf16, #tpu.memory_space<vmem>>, %arg3: memref<128x128xbf16, #tpu.memory_space<vmem>>, %arg4: memref<24x128xf32, #tpu.memory_space<vmem>>, %arg5: memref<1x24x128xf32, #tpu.memory_space<vmem>>) attributes {dimension_semantics = [#tpu.dimension_semantics<parallel>, #tpu.dimension_semantics<parallel>], iteration_bounds = array<i64: 1, 2>, scalar_prefetch = 0 : i64, scratch_operands = 0 : i64, tpu.core_type = #tpu.core_type<tc>, window_params = [{transform_indices = @transform_0, window_bounds = array<i64: 1, 24, 128>}, {pipeline_mode = #tpu.pipeline_mode<synchronous>, transform_indices = @transform_1, window_bounds = array<i64: 128, 128>}, {transform_indices = @transform_2, window_bounds = array<i64: 24, 128>}, {transform_indices = @transform_3, window_bounds = array<i64: 1, 24, 128>}]} {
    %c0 = arith.constant 0 : index
    %c0_0 = arith.constant 0 : index
    %c0_1 = arith.constant 0 : index
    %0 = vector.load %arg2[%c0, %c0_0, %c0_1] : memref<1x24x128xbf16, #tpu.memory_space<vmem>>, vector<1x24x128xbf16>
    %1 = vector.shape_cast %0 : vector<1x24x128xbf16> to vector<24x128xbf16>
    %c0_2 = arith.constant 0 : index
    %c0_3 = arith.constant 0 : index
    %2 = vector.load %arg3[%c0_2, %c0_3] : memref<128x128xbf16, #tpu.memory_space<vmem>>, vector<128x128xbf16>
    %cst = arith.constant dense<0.000000e+00> : vector<24x128xf32>
    %3 = tpu.matmul %1, %2, %cst {dimension_numbers = #tpu.dot_dimension_numbers<[1], [0], [0], [1], [0, 0, 1, 1], [], []>} : vector<24x128xbf16>, vector<128x128xbf16>, vector<24x128xf32> -> vector<24x128xf32>
    %c0_4 = arith.constant 0 : index
    %c0_5 = arith.constant 0 : index
    %4 = vector.load %arg4[%c0_4, %c0_5] : memref<24x128xf32, #tpu.memory_space<vmem>>, vector<24x128xf32>
    %5 = arith.addf %3, %4 : vector<24x128xf32>
    %c0_6 = arith.constant 0 : index
    %c0_7 = arith.constant 0 : index
    %c0_8 = arith.constant 0 : index
    %6 = vector.load %arg5[%c0_6, %c0_7, %c0_8] : memref<1x24x128xf32, #tpu.memory_space<vmem>>, vector<1x24x128xf32>
    %7 = vector.shape_cast %6 : vector<1x24x128xf32> to vector<24x128xf32>
    %8 = vector.shape_cast %5 : vector<24x128xf32> to vector<1x24x128xf32>
    tpu.vector_store %arg5[%c0_6, %c0_7, %c0_8], %8 {strides = array<i32>} : memref<1x24x128xf32, #tpu.memory_space<vmem>>, vector<1x24x128xf32>,
    return
  }
  func.func @transform_0(%arg0: i32, %arg1: i32) -> (i32, i32, i32) {
    %c0_i32 = arith.constant 0 : i32
    %c0_i32_0 = arith.constant 0 : i32
    return %arg1, %arg0, %c0_i32 : i32, i32, i32
  }
  func.func @transform_1(%arg0: i32, %arg1: i32) -> (i32, i32) {
    %c0_i32 = arith.constant 0 : i32
    %c0_i32_0 = arith.constant 0 : i32
    %c0_i32_1 = arith.constant 0 : i32
    return %c0_i32, %c0_i32_0 : i32, i32
  }
  func.func @transform_2(%arg0: i32, %arg1: i32) -> (i32, i32) {
    %c0_i32 = arith.constant 0 : i32
    %c0_i32_0 = arith.constant 0 : i32
    return %arg0, %c0_i32 : i32, i32
  }
  func.func @transform_3(%arg0: i32, %arg1: i32) -> (i32, i32, i32) {
    %c0_i32 = arith.constant 0 : i32
    %c0_i32_0 = arith.constant 0 : i32
    return %arg1, %arg0, %c0_i32 : i32, i32, i32
  }
}

</mosaic_0001>

<bundles_post_ra>
// kernel: tpu_custom_call.1
= control target key start
LH: loop header
LB: loop body
LE: loop exit
PB: predicated region body
PF: predicated region fallthrough
CT: control target
= control target key end

     0   :  { %8 = vsyncpa [#allocation3], 0  ;;  %s1124_s0 = inlined_call_operand.hbm [shape: bf16[2,24,128], index: 0, kind: input, shape index: {}]   ;;  %s1125_s1 = inlined_call_operand.hbm [shape: bf16[128,128], index: 1, kind: input, shape index: {}]   ;;  %s1126_s2 = inlined_call_operand.hbm [shape: f32[24,128], index: 2, kind: input, shape index: {}]   ;;  %s1127_s3 = inlined_call_operand.hbm [shape: f32[2,24,128], index: 3, kind: output, shape index: {}]  }
   0x1   :  { %10 = vsyncpa [#allocation3 + $0x1], 0 }
   0x2   :  { %11 = vsyncpa [#allocation6], 0 }
   0x3   :  { %12 = vsyncpa [#allocation4], 0 }
   0x4   :  { %14 = vsyncpa [#allocation4 + $0x1], 0  ;;  %s864_s12 = smov 0   ;;  %s866_s13 = smov 0  }
   0x5   :  { %s868_s14 = smov 0   ;;  %s870_s15 = smov 0  }
   0x6   :  { %s872_s16 = smov 0   ;;  %s874_s17 = smov 0  }
   0x7 LB: > { %s503_s18 = sadd.s32 4294967295, %s832_s17   ;;  %s504_s19 = sadd.s32 4294967294, %s832_s17   ;;  %s832_s17 = sphi %s874_s17, %s20_s17   ;;  %s828_s16 = sphi %s872_s16, %s1149_s16   ;;  %s824_s15 = sphi %s870_s15, %s1148_s15   ;;  %s820_s14 = sphi %s868_s14, %s1147_s14   ;;  %s816_s13 = sphi %s866_s13, %s1146_s13   ;;  %s812_s12 = sphi %s864_s12, %s1145_s12  }
   0x8   : > { %p54_p0 = scmp.ne.s32.totalorder %s816_s13, %s812_s12  ;;  %p898_p1 = scmp.eq.s32.totalorder %s503_s18, 0 }
   0x9   : > { %p902_p2 = scmp.eq.s32.totalorder %s503_s18, 1  ;;  %p133_p3 = scmp.eq.s32.totalorder %s504_s19, 1 }
   0xa   : > { %s1132_s20 = scalar_select %p898_p1, 1, 0 }
   0xb   : > { %p908_p4 = por %p898_p1, %p54_p0  ;;  %p505_p5 = scmp.ge.s32.totalorder %s832_s17, 1 }
   0xc   : > { %p913_p6 = por %p133_p3, %p54_p0  ;;  %p140_p7 = scmp.lt.s32.totalorder %s832_s17, 3 }
   0xd   : > { %s1134_s22 = scalar_select %p908_p4, 1, 0 }
   0xe   : > { %s1135_s23 = scalar_select %p913_p6, 1, 0 }
   0xf   : > { %p918_p8 = pnand %p505_p5, %p140_p7  ;;  %s834_s25 = smov [#allocation5]  }
  0x10   : > { %s152_s26 = sshll.u32 %s834_s25, 4  ;;  %s835_s28 = smov [#allocation7]   ;;  %s922_s26 = int_to_ptr.vmem [resolvable:$true] %s152_s26 }
  0x11   : > { %p573_p9 = pneg %p918_p8  ;;  %s168_s29 = sshll.u32 %s835_s28, 4  ;;  %s933_s29 = int_to_ptr.vmem [resolvable:$true] %s168_s29 }
  0x12   : > { %s660_s5 = scalar_lea.hbm %s1125_s1, 1024 }
  0x13   : > { %p929_p11 = pnand %p573_p9, %p898_p1  ;;  %p661_p12 = scmp.ne.s32.totalorder %s1125_s1, %s660_s5 }
  0x14   : > { %p667_p5 = scmp.lt.u32.totalorder %s660_s5, %s1125_s1 }
  0x15   : > { %p662_p13 = pneg %p929_p11 }
  0x17   : > { %p663_p0 = pnand %p662_p13, %p661_p12 }
  0x19   : > { %p664_p3 = pneg %p663_p0 }
  0x1b   : > { %p669_p7 = pnand %p667_p5, %p664_p3 }
  0x1d   : > { %672 = shalt.err (!%p669_p7)
}
  0x1e   : > { %s673_s10 = scalar_lea.vmem %s922_s26, 1024  ;;  %p681_p1 = scmp.lt.s32.totalorder %s922_s26, %s922_s26 }
  0x1f   : > { %p674_p9 = scmp.ne.s32.totalorder %s922_s26, %s673_s10  ;;  %p682_p12 = scmp.lt.s32.totalorder %s673_s10, %s673_s10 }
  0x21   : > { %p676_p10 = pnand %p674_p9, %p662_p13  ;;  %p683_p0 = por %p682_p12, %p681_p1 }
  0x23   : > { %p677_p6 = pneg %p676_p10 }
  0x25   : > { %p684_p4 = pnand %p683_p0, %p677_p6 }
  0x27   : > { %687 = shalt.err (!%p684_p4)
}
  0x28   : > { %s836_s11 = smov 64   ;;  %s837_s18 = smov 4  }
  0x29   : > { %576 = dma.hbm_to_vmem [thread:$0]  (!%p929_p11), %s1125_s1, 1024, %s922_s26, [#allocation6], %s836_s11, %s836_s11, %s837_s18  }
  0x2a   : > { %s688_s4 = scalar_lea.hbm %s1126_s2, 384 }
  0x2b   : > { %p689_p1 = scmp.ne.s32.totalorder %s1126_s2, %s688_s4  ;;  %p695_p10 = scmp.lt.u32.totalorder %s688_s4, %s1126_s2 }
  0x2d   : > { %p691_p4 = pnand %p689_p1, %p662_p13 }
  0x2f   : > { %p692_p6 = pneg %p691_p4 }
  0x31   : > { %p697_p3 = pnand %p695_p10, %p692_p6 }
  0x33   : > { %700 = shalt.err (!%p697_p3)
}
  0x34   : > { %s701_s26 = scalar_lea.vmem %s933_s29, 384  ;;  %p709_p12 = scmp.lt.s32.totalorder %s933_s29, %s933_s29 }
  0x35   : > { %p702_p5 = scmp.ne.s32.totalorder %s933_s29, %s701_s26  ;;  %p710_p0 = scmp.lt.s32.totalorder %s701_s26, %s701_s26 }
  0x37   : > { %p704_p7 = pnand %p702_p5, %p662_p13  ;;  %p711_p1 = por %p710_p0, %p709_p12 }
  0x39   : > { %p705_p9 = pneg %p704_p7 }
  0x3b   : > { %p712_p4 = pnand %p711_p1, %p705_p9 }
  0x3d   : > { %715 = shalt.err (!%p712_p4)
}
  0x3e   : > { %s838_s9 = smov 128   ;;  %s839_s10 = smov 8  }
  0x3f   : > { %579 = dma.hbm_to_vmem [thread:$0]  (!%p929_p11), %s1126_s2, 384, %s933_s29, [#allocation6], %s838_s9, %s838_s9, %s839_s10  }
  0x40   : > { %s29_s28 = sadd.s32 1, %s828_s16  ;;  %s41_s30 = sadd.s32 1, %s820_s14 }
  0x41   : > { %p30_p13 = scmp.ge.s32.totalorder %s29_s28, 2  ;;  %p48_p6 = scmp.ne.s32.totalorder %s820_s14, %s816_s13 }
  0x42   : > { %p49_p10 = scmp.eq.s32.totalorder %s832_s17, 0  ;;  %p590_p3 = scmp.lt.s32.totalorder %s832_s17, 2 }
  0x43   : > { %s1151_s28 = smov (%p30_p13, %s29_s28), 0  ;;  %p1000_p7 = por %p902_p2, %p48_p6 }
  0x44   : > { %p50_p5 = por %p49_p10, %p48_p6  ;;  %s36_s27 = ssub.s32 %s828_s16, %s1151_s28 }
  0x45   : > { %s1138_s4 = scalar_select %p1000_p7, 1, 0 }
  0x46   : > { %s182_s5 = sand.u32 1, %s820_s14   ;;  %p39_p9 = scmp.eq.s32.totalorder %s36_s27, 0 }
  0x47   : > { %s556_s29 = smul.u32 12, %s182_s5  ;;  %p1007_p11 = pnand %p590_p3, %p50_p5 }
  0x48   : > { %s1012_s7 = scalar_select %p39_p9, %s820_s14, %s41_s30  }
  0x49   : > { %s557_s8 = smul.u32 192, %s828_s16  ;;  %s186_s26 = scalar_lea.vmem [#allocation2], %s556_s29 }
  0x4a   : > { %s195_s9 = sshll.u32 %s186_s26, 4  ;;  %s1022_s25 = scalar_lea.sflag [#allocation3], %s182_s5  ;;  %s1020_s9 = int_to_ptr.vmem [resolvable:$true] %s195_s9 }
  0x4b   : > { %s1018_s19 = scalar_lea.hbm %s1124_s0, %s557_s8  ;;  %p718_p12 = pneg %p1007_p11 }
  0x4c   : > { %s716_s27 = scalar_lea.hbm %s1018_s19, 192  ;;  %s721_s8 = scalar_lea.hbm %s1124_s0, 384 }
  0x4d   : > { %p717_p2 = scmp.ne.s32.totalorder %s1018_s19, %s716_s27  ;;  %p722_p4 = scmp.lt.u32.totalorder %s1018_s19, %s1124_s0 }
  0x4e   : > { %p723_p13 = scmp.lt.u32.totalorder %s721_s8, %s716_s27  ;;  %p725_p10 = scmp.lt.u32.totalorder %s716_s27, %s1018_s19 }
  0x4f   : > { %p719_p0 = pnand %p718_p12, %p717_p2 }
  0x50   : > { %p724_p6 = por %p723_p13, %p722_p4 }
  0x51   : > { %p720_p1 = pneg %p719_p0 }
  0x52   : > { %p726_p3 = por %p725_p10, %p724_p6 }
  0x54   : > { %p727_p5 = pnand %p726_p3, %p720_p1 }
  0x56   : > { %730 = shalt.err (!%p727_p5)
}
  0x57   : > { %s731_s5 = scalar_lea.vmem %s1020_s9, 192  ;;  %s840_s10 = smov [#allocation2]  }
  0x58   : > { %p732_p9 = scmp.ne.s32.totalorder %s1020_s9, %s731_s5  ;;  %s736_s30 = sshll.u32 %s840_s10, 4  ;;  %s737_s30 = int_to_ptr.vmem [resolvable:$false] %s736_s30 }
  0x59   : > { %s738_s29 = scalar_lea.vmem %s737_s30, 384  ;;  %p739_p7 = scmp.lt.s32.totalorder %s1020_s9, %s737_s30 }
  0x5a   : > { %p734_p2 = pnand %p732_p9, %p718_p12  ;;  %p740_p4 = scmp.lt.s32.totalorder %s738_s29, %s731_s5 }
  0x5c   : > { %p735_p0 = pneg %p734_p2  ;;  %p741_p13 = por %p740_p4, %p739_p7 }
  0x5e   : > { %p742_p6 = pnand %p741_p13, %p735_p0 }
  0x60   : > { %745 = shalt.err (!%p742_p6)
}
  0x61   : > { %583 = dma.hbm_to_vmem [thread:$0]  (!%p1007_p11), %s1018_s19, 192, %s1020_s9, %s1022_s25, %s836_s11, %s836_s11, %s837_s18  }
  0x62   : > { %207 = sbr.rel (%p918_p8) target bundleno = 374 (0x176), region = 32  ;;  %s1056_s27 = sand.u32 (!%p918_p8), 1, %s816_s13  }
  0x63   : > { %s558_s8 = smul.u32 (!%p918_p8), 12, %s1056_s27  ;;  %s210_s26 = scalar_lea.sflag (!%p918_p8), [#allocation3], %s1056_s27 }
  0x64   : > { %p1140_p7 = scmp.ne.s32.totalorder (!%p918_p8), %s1134_s22, 0 }
  0x65   : > { %s213_s21 = scalar_lea.vmem (!%p918_p8), [#allocation2], %s558_s8 }
  0x69   : > { %799 = dma.done.wait (%p1140_p7), %s210_s26, 192  }
  0x6a   : > { %801 = vsyncadd (%p1140_p7), %s210_s26, 4294967104  ;;  %p1141_p12 = scmp.ne.s32.totalorder %s1132_s20, 0 }
  0x6c   : > { %803 = dma.done.wait (%p1141_p12), [#allocation6], 1408  }
  0x6d   : > { %805 = vsyncadd (%p1141_p12), [#allocation6], 4294965888  ;;  %v650_v0 = vld [vmem:[#allocation5] sm:$0xff]   ;;  %v651_v1 = vld [vmem:[#allocation5 + $0x8] sm:$0xff]   ;;  %s559_s20 = smul.u32 24, %s1056_s27  ;;  %p1142_p11 = scmp.ne.s32.totalorder %s1138_s4, 0 }
  0x6e   : > { %536 = vmatprep.subr.bf16.mxu0 %v650_v0  ;;  %v652_v2 = vld [vmem:[#allocation5 + $0x10] sm:$0xff]   ;;  %v653_v3 = vld [vmem:[#allocation5 + $0x18] sm:$0xff]   ;;  %v654_v5 = vld [vmem:[#allocation5 + $0x20] sm:$0xff]   ;;  %s560_s11 = smul.u32 384, %s824_s15  ;;  %s380_s15 = scalar_lea.sflag [#allocation4], %s1056_s27 }
  0x6f   : > { %537 = vmatpush3.bf16.msra.mxu0 %v650_v0  ;;  %v658_v4 = vld [vmem:[%s213_s21] sm:$0xff]   ;;  %v659_v9 = vld [vmem:[%s213_s21 + $0x8] ss:$0 sps:$4 sm:$0xff]   ;;  %s243_s22 = scalar_lea.vmem [#allocation8], %s559_s20  ;;  %v267_v11 = vld [vmem:[#allocation7] sm:$0xff]  ;;  %s841_s25 = smov [#allocation8]  }
  0x70   : > { %538 = vmatprep.subr.bf16.mxu0 %v651_v1  ;;  %552 = vmatprep.mubr.bf16.mxu0 %v658_v4  ;;  %v655_v6 = vld [vmem:[#allocation5 + $0x28] sm:$0xff]   ;;  %v656_v7 = vld [vmem:[#allocation5 + $0x30] sm:$0xff]   ;;  %v657_v8 = vld [vmem:[#allocation5 + $0x38] sm:$0xff]   ;;  %s395_s24 = sshll.u32 %s243_s22, 4  ;;  %s1075_s9 = scalar_lea.hbm %s1127_s3, %s560_s11  ;;  %s1070_s24 = int_to_ptr.vmem [resolvable:$true] %s395_s24 }
  0x71   : > { %v269_v10 = vld [vmem:[#allocation7 + $0x10] sm:$0xff]  ;;  %v268_v15 = vld [vmem:[#allocation7 + $0x8] sm:$0xff]  ;;  %s746_s19 = scalar_lea.vmem %s1070_s24, 384  ;;  %s750_s5 = sshll.u32 %s841_s25, 4  ;;  %s751_s5 = int_to_ptr.vmem [resolvable:$false] %s750_s5 }
  0x72   : > { %p747_p8 = scmp.ne.s32.totalorder %s1070_s24, %s746_s19  ;;  %s752_s10 = scalar_lea.vmem %s751_s5, 768 }
  0x73   : > { %539 = vmatpush3.bf16.msra.mxu0 %v651_v1  ;;  %p753_p3 = scmp.lt.s32.totalorder %s1070_s24, %s751_s5  ;;  %p754_p5 = scmp.lt.s32.totalorder %s752_s10, %s746_s19 }
  0x74   : > { %540 = vmatprep.subr.bf16.mxu0 %v652_v2  ;;  %p748_p1 = pnand %p747_p8, %p1142_p11 }
  0x75   : > { %p755_p9 = por %p754_p5, %p753_p3 }
  0x76   : > { %p749_p10 = pneg %p748_p1 }
  0x77   : > { %541 = vmatpush3.bf16.msra.mxu0 %v652_v2 }
  0x78   : > { %542 = vmatprep.subr.bf16.mxu0 %v653_v3  ;;  %p756_p2 = pnand %p755_p9, %p749_p10 }
  0x7b   : > { %543 = vmatpush3.bf16.msra.mxu0 %v653_v3 }
  0x7c   : > { %544 = vmatprep.subr.bf16.mxu0 %v654_v5 }
  0x7f   : > { %545 = vmatpush3.bf16.msra.mxu0 %v654_v5 }
  0x80   : > { %546 = vmatprep.subr.bf16.mxu0 %v655_v6 }
  0x83   : > { %547 = vmatpush3.bf16.msra.mxu0 %v655_v6 }
  0x84   : > { %548 = vmatprep.subr.bf16.mxu0 %v656_v7 }
  0x87   : > { %549 = vmatpush3.bf16.msra.mxu0 %v656_v7 }
  0x88   : > { %550 = vmatprep.subr.bf16.mxu0 %v657_v8 }
  0x8b   : > { %551 = vmatpush3.bf16.msra.mxu0 %v657_v8 }
  0x8e   : > { %553 = vmatmul.mubr.bf16.vlgmr.msra.gmra.mrb[0].mxu0 %v659_v9 }
 0x161   : > { %v554_v12 = vpop.f32.mrb[0].mxu0 }
 0x162   : > { %v371_v13 = vadd.f32 %v554_v12, %v269_v10  ;;  %v362_v14 = vpop.f32.mrb[1].mxu0 }
 0x163   : > { %v363_v16 = vadd.f32 %v362_v14, %v267_v11  ;;  %v555_v17 = vpop.f32.mrb[2].mxu0 }
 0x164   : > { %378 = vst [vmem:[%s243_s22 + $0x10] sm:$0xff] %v371_v13  ;;  %v365_v18 = vpop.f32.mrb[3].mxu0 }
 0x165   : > { %376 = vst [vmem:[%s243_s22] sm:$0xff] %v363_v16  ;;  %v366_v19 = vadd.f32 %v365_v18, %v268_v15 }
 0x167   : > { %377 = vst [vmem:[%s243_s22 + $0x8] sm:$0xff] %v366_v19 }
 0x168   : > { %759 = shalt.err (!%p756_p2)
}
 0x169   : > { %s760_s30 = scalar_lea.hbm %s1075_s9, 384  ;;  %s764_s26 = scalar_lea.hbm %s1127_s3, 768 }
 0x16a   : > { %p761_p0 = scmp.ne.s32.totalorder %s1075_s9, %s760_s30  ;;  %p765_p6 = scmp.lt.u32.totalorder %s1075_s9, %s1127_s3 }
 0x16b   : > { %p766_p7 = scmp.lt.u32.totalorder %s764_s26, %s760_s30  ;;  %p768_p8 = scmp.lt.u32.totalorder %s760_s30, %s1075_s9 }
 0x16c   : > { %p762_p4 = pnand %p761_p0, %p1142_p11 }
 0x16d   : > { %p767_p12 = por %p766_p7, %p765_p6 }
 0x16e   : > { %p763_p13 = pneg %p762_p4 }
 0x16f   : > { %p769_p1 = por %p768_p8, %p767_p12 }
 0x171   : > { %p770_p10 = pnand %p769_p1, %p763_p13 }
 0x173   : > { %773 = shalt.err (!%p770_p10)
}
 0x174   : > { %s842_s22 = smov 128   ;;  %s843_s11 = smov 8  }
 0x175   : > { %571 = dma.vmem_to_hbm [thread:$0]  (%p1142_p11), %s1070_s24, 384, %s1075_s9, %s380_s15, %s842_s22, %s842_s22, %s843_s11  }
 0x176 PF: > { %s410_s18 = sand.u32 1, %s812_s12   ;;  %p1143_p3 = scmp.ne.s32.totalorder %s1135_s23, 0 }
 0x177   : > { %p1144_p5 = scmp.ge.s32.totalorder %s832_s17, 2  ;;  %s411_s6 = scalar_lea.sflag [#allocation4], %s410_s18 }
 0x179   : > { %p585_p9 = pnand %p1144_p5, %p1143_p3 }
 0x17b   : > { %807 = dma.done.wait (!%p585_p9), %s411_s6, 384  }
 0x17c   : > { %809 = vsyncadd (!%p585_p9), %s411_s6, 4294966912  ;;  %s20_s17 = sadd.s32 1, %s832_s17   ;;  %s1145_s12 = smov %s816_s13 }
 0x17d   : > { %p17_p2 = scmp.ge.s32.totalorder %s20_s17, 4   ;;  %s1146_s13 = smov %s820_s14 }
 0x17e   : > { %s1147_s14 = smov %s1012_s7  ;;  %s1148_s15 = smov %s828_s16 }
 0x17f   : > { %s1149_s16 = smov %s1151_s28  ;;  %19 = sbr.rel (!%p17_p2) target bundleno = 7 (0x7), region = 86 }
 0x186   :  { %416 = vsyncpa [#allocation3], 1 }
 0x187   :  { %418 = vsyncpa [#allocation3 + $0x1], 1 }
 0x188   :  { %419 = vsyncpa [#allocation6], 1 }
 0x189   :  { %420 = vsyncpa [#allocation4], 1 }
 0x18a   :  { %422 = vsyncpa [#allocation4 + $0x1], 1 }

</bundles_post_ra>
